<compile_context>
chip_gen: v7x
topology: tpu7x:2x2x1
jax: 0.10.0
libtpu: 0.0.40
codegen_flags: <defaults>
</compile_context>

<pallas_src>
import functools

import jax
import jax.numpy as jnp
from jax.experimental import pallas as pl
from jax.experimental.pallas import tpu as pltpu


def _round_up(x, m):
    return ((x + m - 1) // m) * m


def _round_down(x, m):
    return (x // m) * m


def _vmem_budgets():
    """Returns (stream_budget_bytes, vmem_limit_bytes), generation-aware."""
    vmem_cap = None
    try:
        info = pltpu.get_tpu_info()
        vmem_cap = int(getattr(info, "vmem_capacity_bytes", 0)) or None
    except Exception:
        vmem_cap = None
    if vmem_cap is None:
        vmem_cap = 64 * 1024 * 1024            # assume the smallest (v7x-like)
    if vmem_cap >= 100 * 1024 * 1024:          # v5e / v6e: 128 MiB physical VMEM
        return 24 * 1024 * 1024, 64 * 1024 * 1024
    return 12 * 1024 * 1024, 48 * 1024 * 1024  # v7x: 64 MiB physical VMEM


def _focal_loss_kernel(logits_ref, targets_ref, out_ref, *, alpha, gamma,
                       n_valid, tile_n, per_row_output, apply_row_mask):
    x = logits_ref[...]                       # (T, C); bf16 stays bf16
    if x.dtype not in (jnp.bfloat16, jnp.float32):
        x = x.astype(jnp.float32)
    t = targets_ref[...]                      # (T, 1) int32
    tn, c = x.shape

    # Numerically-stable log-sum-exp. max/shift/select stay in the input dtype
    # (halves vreg/VMEM pressure for bf16); the exp-sum accumulates in f32.
    m = jnp.max(x, axis=1, keepdims=True)                              # (T, 1)
    shifted = x - m                                                    # (T, C)
    sum_exp = jnp.sum(jnp.exp(shifted), axis=1, keepdims=True,
                      dtype=jnp.float32)                               # (T, 1)
    lse = jnp.log(sum_exp)                                             # (T, 1)

    # Gather the target column via compare+select (no one_hot / probs /
    # focal_weight (T, C) temporaries are materialized).
    col = jax.lax.broadcasted_iota(jnp.int32, (tn, c), 1)
    x_t = jnp.sum(jnp.where(col == t, shifted, 0), axis=1, keepdims=True,
                  dtype=jnp.float32)                                   # (T, 1)

    logp_t = x_t - lse                                                 # (T, 1)
    p_t = jnp.exp(logp_t)
    w = 1.0 - p_t

    # Focal weight: integer gamma -> repeated multiply (VPU); else pow (EUP).
    gamma_f = float(gamma)
    if gamma_f.is_integer() and 0 <= int(gamma_f) <= 16:
        gi = int(gamma_f)
        fw = jnp.ones_like(w) if gi == 0 else w
        for _ in range(max(gi - 1, 0)):
            fw = fw * w
    else:
        fw = w ** gamma_f

    per_row = (-float(alpha)) * fw * logp_t                            # (T, 1)

    # Mask rows past the true batch size (only emitted when a partial last
    # tile exists -- static Python check).
    if apply_row_mask:
        i = pl.program_id(0)
        row = i * tile_n + jax.lax.broadcasted_iota(jnp.int32, (tn, 1), 0)
        per_row = jnp.where(row < n_valid, per_row, 0.0)

    if per_row_output:
        out_ref[...] = per_row
    else:
        out_ref[...] = jnp.sum(per_row).reshape(1, 1, 1)


def focal_loss(logits, targets, *, alpha=1.0, gamma=2.0, reduction="mean"):
    """Pallas TPU focal loss. logits: (N, C) float, targets: (N,) int."""
    n, c = logits.shape
    targets2d = targets.astype(jnp.int32).reshape(n, 1)

    itemsize = jnp.dtype(logits.dtype).itemsize
    sub = {4: 8, 2: 16, 1: 32}.get(itemsize, 8)   # sublane granule per dtype
    lane_c = _round_up(max(c, 1), 128)            # lanes occupied per row
    per_row_output = reduction not in ("mean", "sum")

    stream_budget, vmem_limit = _vmem_budgets()

    # Per-row VMEM bytes: double-buffered logits block, the lane-padded
    # (tile_n,1)->(tile_n,128) int32 targets block, the (tile_n,1)->(tile_n,128)
    # f32 output block (per-row path only), plus ~3 f32 (T, lane_c)
    # compute temporaries inside the kernel body.
    per_row_bytes = 2 * (lane_c * itemsize + 128 * 4
                         + (128 * 4 if per_row_output else 0))
    per_row_bytes += 3 * lane_c * 4

    max_tile = max(sub, _round_down(stream_budget // per_row_bytes, sub))
    tile_n = min(8192, max_tile, _round_up(n, sub))
    # Keep >= 2 grid tiles when possible so dimension_semantics=("parallel",)
    # can shard across a v7x megacore's two TensorCores.
    if n > sub:
        tile_n = min(tile_n, max(sub, _round_up(-(-n // 2), sub)))
    tile_n = max(sub, _round_down(tile_n, sub))
    num_tiles = -(-n // tile_n)
    # TODO(synk): for vocab-scale C a second "arbitrary" grid axis over C with
    # an online (running max/sum) LSE would keep tile_n large instead of
    # collapsing toward `sub` rows.

    apply_row_mask = (n % tile_n) != 0

    kernel = functools.partial(
        _focal_loss_kernel,
        alpha=float(alpha),
        gamma=float(gamma),
        n_valid=n,
        tile_n=tile_n,
        per_row_output=per_row_output,
        apply_row_mask=apply_row_mask,
    )

    if per_row_output:
        # TODO(synk): a lane-dense (1, tile_n) output would avoid masked
        # vst.msk partial stores, but needs an in-kernel (T,1)->(1,T) relayout;
        # kept sublane-major (output traffic is only 4 B/row vs C*itemsize
        # B/row of input).
        out_shape = jax.ShapeDtypeStruct((num_tiles * tile_n, 1), jnp.float32)
        out_spec = pl.BlockSpec((tile_n, 1), lambda i: (i, 0))
    else:
        # One scalar partial sum per tile on a "parallel" axis; with the large
        # tiles above the step count is small, so a resident accumulator
        # (constant output index_map + "arbitrary") would buy only ~us.
        out_shape = jax.ShapeDtypeStruct((num_tiles, 1, 1), jnp.float32)
        out_spec = pl.BlockSpec((1, 1, 1), lambda i: (i, 0, 0))

    out = pl.pallas_call(
        kernel,
        out_shape=out_shape,
        grid_spec=pltpu.PrefetchScalarGridSpec(
            num_scalar_prefetch=0,
            grid=(num_tiles,),
            in_specs=[
                pl.BlockSpec((tile_n, c), lambda i: (i, 0)),
                pl.BlockSpec((tile_n, 1), lambda i: (i, 0)),
            ],
            out_specs=out_spec,
        ),
        compiler_params=pltpu.CompilerParams(
            dimension_semantics=("parallel",),
            vmem_limit_bytes=vmem_limit,
        ),
    )(logits, targets2d)

    if per_row_output:
        return out[:n, 0]                      # 'none' (and any other reduction)
    total = jnp.sum(out[:, 0, 0])
    if reduction == "sum":
        return total
    return total / n                           # 'mean'


def _focal_loss_ref(logits, targets, alpha=1.0, gamma=2.0, reduction="mean"):
    logp = jax.nn.log_softmax(logits.astype(jnp.float32), axis=1)
    one_hot = jax.nn.one_hot(targets, logits.shape[1], dtype=jnp.float32)
    probs = jnp.exp(logp)
    focal_weight = alpha * (1.0 - probs) ** gamma
    loss = (-focal_weight * logp * one_hot).sum(axis=1)
    if reduction == "mean":
        return loss.mean()
    if reduction == "sum":
        return loss.sum()
    return loss


if __name__ == "__main__":
    key = jax.random.PRNGKey(0)

    # Small shape consistent with the module: batch=8, num_classes=32.
    k1, k2 = jax.random.split(key)
    logits = jax.random.normal(k1, (8, 32), dtype=jnp.float32)
    targets = jax.random.randint(k2, (8,), 0, 32, dtype=jnp.int32)
    out = jax.block_until_ready(focal_loss(logits, targets))
    ref = _focal_loss_ref(logits, targets)
    assert jnp.allclose(out, ref, atol=1e-5, rtol=1e-4), (out, ref)

    # Non-multiple-of-8 batch + odd class count exercises the partial-tile
    # row-masking path, the 2-tile ("parallel") grid and all reduction modes.
    k3, k4 = jax.random.split(k1)
    logits2 = jax.random.normal(k3, (20, 40), dtype=jnp.float32)
    targets2 = jax.random.randint(k4, (20,), 0, 40, dtype=jnp.int32)
    for red in ("mean", "sum", "none"):
        out2 = jax.block_until_ready(focal_loss(logits2, targets2, reduction=red))
        ref2 = _focal_loss_ref(logits2, targets2, reduction=red)
        assert jnp.allclose(out2, ref2, atol=1e-5, rtol=1e-4), (red, out2, ref2)

    # bf16 logits exercise the no-upcast path (f32 exp-sum accumulation);
    # reference runs in f32 on the same bf16-quantized values.
    k5, k6 = jax.random.split(k2)
    logits3 = jax.random.normal(k5, (32, 32), dtype=jnp.float32).astype(jnp.bfloat16)
    targets3 = jax.random.randint(k6, (32,), 0, 32, dtype=jnp.int32)
    out3 = jax.block_until_ready(focal_loss(logits3, targets3))
    ref3 = _focal_loss_ref(logits3.astype(jnp.float32), targets3)
    assert jnp.allclose(out3, ref3, atol=5e-2, rtol=5e-2), (out3, ref3)

    print("KERNEL_OK")
</pallas_src>

<mosaic_0001>
module attributes {stable_mosaic.version = 11 : i64} {
  func.func @_focal_loss_kernel(%arg0: i32, %arg1: memref<8x32xf32, #tpu.memory_space<vmem>>, %arg2: memref<8x1xi32, #tpu.memory_space<vmem>>, %arg3: memref<1x1x1xf32, #tpu.memory_space<vmem>>) attributes {dimension_semantics = [#tpu.dimension_semantics<parallel>], iteration_bounds = array<i64: 1>, scalar_prefetch = 0 : i64, scratch_operands = 0 : i64, tpu.core_type = #tpu.core_type<tc>, window_params = [{transform_indices = @transform_0, window_bounds = array<i64: 8, 32>}, {transform_indices = @transform_1, window_bounds = array<i64: 8, 1>}, {transform_indices = @transform_2, window_bounds = array<i64: 1, 1, 1>}]} {
    %c0 = arith.constant 0 : index
    %c0_0 = arith.constant 0 : index
    %0 = vector.load %arg1[%c0, %c0_0] : memref<8x32xf32, #tpu.memory_space<vmem>>, vector<8x32xf32>
    %c0_1 = arith.constant 0 : index
    %c0_2 = arith.constant 0 : index
    %1 = vector.load %arg2[%c0_1, %c0_2] : memref<8x1xi32, #tpu.memory_space<vmem>>, vector<8x1xi32>
    %cst = arith.constant dense<0xFF800000> : vector<8xf32>
    %2 = vector.multi_reduction <maximumf>, %0, %cst [1] : vector<8x32xf32> to vector<8xf32>
    %3 = vector.shape_cast %2 : vector<8xf32> to vector<8x1xf32>
    %4 = vector.broadcast %3 : vector<8x1xf32> to vector<8x32xf32>
    %5 = arith.subf %0, %4 : vector<8x32xf32>
    %6 = math.exp %5 : vector<8x32xf32>
    %cst_3 = arith.constant dense<0.000000e+00> : vector<8xf32>
    %7 = vector.multi_reduction <add>, %6, %cst_3 [1] : vector<8x32xf32> to vector<8xf32>
    %8 = vector.shape_cast %7 : vector<8xf32> to vector<8x1xf32>
    %9 = math.log %8 : vector<8x1xf32>
    %10 = tpu.iota {dimensions = array<i32: 1>} : vector<8x32xi32>
    %11 = vector.broadcast %1 : vector<8x1xi32> to vector<8x32xi32>
    %12 = arith.cmpi eq, %10, %11 : vector<8x32xi32>
    %c0_i32 = arith.constant 0 : i32
    %13 = arith.sitofp %c0_i32 : i32 to f32
    %14 = vector.broadcast %13 : f32 to vector<8x32xf32>
    %15 = arith.select %12, %5, %14 : vector<8x32xi1>, vector<8x32xf32>
    %cst_4 = arith.constant dense<0.000000e+00> : vector<8xf32>
    %16 = vector.multi_reduction <add>, %15, %cst_4 [1] : vector<8x32xf32> to vector<8xf32>
    %17 = vector.shape_cast %16 : vector<8xf32> to vector<8x1xf32>
    %18 = arith.subf %17, %9 : vector<8x1xf32>
    %19 = math.exp %18 : vector<8x1xf32>
    %cst_5 = arith.constant 1.000000e+00 : f32
    %20 = vector.broadcast %cst_5 : f32 to vector<8x1xf32>
    %21 = arith.subf %20, %19 : vector<8x1xf32>
    %22 = arith.mulf %21, %21 : vector<8x1xf32>
    %cst_6 = arith.constant -1.000000e+00 : f32
    %23 = vector.broadcast %cst_6 : f32 to vector<8x1xf32>
    %24 = arith.mulf %23, %22 : vector<8x1xf32>
    %25 = arith.mulf %24, %18 : vector<8x1xf32>
    %26 = vector.shape_cast %25 : vector<8x1xf32> to vector<1x8x1xf32>
    %cst_7 = arith.constant dense<0.000000e+00> : vector<1xf32>
    %27 = vector.multi_reduction <add>, %26, %cst_7 [1, 2] : vector<1x8x1xf32> to vector<1xf32>
    %28 = vector.shape_cast %27 : vector<1xf32> to vector<1x1x1xf32>
    %29 = vector.extract %28[0, 0, 0] : f32 from vector<1x1x1xf32>
    %30 = vector.broadcast %29 : f32 to vector<1x1x1xf32>
    %c0_8 = arith.constant 0 : index
    %c0_9 = arith.constant 0 : index
    %c0_10 = arith.constant 0 : index
    %31 = vector.load %arg3[%c0_8, %c0_9, %c0_10] : memref<1x1x1xf32, #tpu.memory_space<vmem>>, vector<1x1x1xf32>
    tpu.vector_store %arg3[%c0_8, %c0_9, %c0_10], %30 {strides = array<i32>} : memref<1x1x1xf32, #tpu.memory_space<vmem>>, vector<1x1x1xf32>,
    return
  }
  func.func @transform_0(%arg0: i32) -> (i32, i32) {
    %c0_i32 = arith.constant 0 : i32
    %c0_i32_0 = arith.constant 0 : i32
    return %arg0, %c0_i32 : i32, i32
  }
  func.func @transform_1(%arg0: i32) -> (i32, i32) {
    %c0_i32 = arith.constant 0 : i32
    %c0_i32_0 = arith.constant 0 : i32
    return %arg0, %c0_i32 : i32, i32
  }
  func.func @transform_2(%arg0: i32) -> (i32, i32, i32) {
    %c0_i32 = arith.constant 0 : i32
    %c0_i32_0 = arith.constant 0 : i32
    %c0_i32_1 = arith.constant 0 : i32
    return %arg0, %c0_i32, %c0_i32_0 : i32, i32, i32
  }
}

</mosaic_0001>

<bundles_post_ra>
// kernel: tpu_custom_call.1
= control target key start
LH: loop header
LB: loop body
LE: loop exit
PB: predicated region body
PF: predicated region fallthrough
CT: control target
= control target key end

     0   :  { %vm14_vm0 = vcmask 261120   ;;  %s144_s0 = inlined_call_operand.vmem [shape: f32[8,32], index: 0, kind: input, shape index: {}]   ;;  %s145_s1 = inlined_call_operand.vmem [shape: s32[8,1], index: 1, kind: input, shape index: {}]   ;;  %s146_s2 = inlined_call_operand.hbm [shape: f32[1,1,1], index: 2, kind: output, shape index: {}]  }
   0x1   :  { %v12_v0 = vld [vmem:[%s144_s0] sm:$0xff] }
   0x2   :  { %7 = vsyncpa [#allocation3], 0  ;;  %v15_v1 = vsel %vm14_vm0, %v12_v0, -inf  ;;  %v106_v2 = vmov 0   ;;  %v13_v3 = vld [vmem:[%s145_s1] sm:$0xff]  ;;  %v26_v7 = vlaneseq  ;;  %vm43_vm2 = vcmask 7168  }
   0x3   :  { %75 = vset.pattern.permute.xlu0 %v106_v2  ;;  %s107_s0 = smov [#allocation2]   ;;  %vm55_vm3 = vcmask 0  }
   0x4   :  { %16 = vmax.xlane.f32.xlu0 %v15_v1  ;;  %v27_v8 = vand.u32 127, %v26_v7  ;;  %s63_s1 = sshll.u32 %s107_s0, 4  ;;  %s64_s1 = int_to_ptr.vmem [resolvable:$true] %s63_s1 }
   0x5   :  { %s82_s14 = scalar_lea.vmem %s64_s1, 16  ;;  %s86_s15 = scalar_lea.vmem %s64_s1, 32 }
   0x6   :  { %p83_p0 = scmp.ne.s32.totalorder %s64_s1, %s82_s14  ;;  %p87_p1 = scmp.lt.s32.totalorder %s64_s1, %s64_s1 }
   0x7   :  { %p88_p2 = scmp.lt.s32.totalorder %s86_s15, %s82_s14 }
   0x9   :  { %p89_p3 = por %p88_p2, %p87_p1 }
   0xb   :  { %p90_p4 = pnand %p89_p3, %p83_p0 }
  0x1a   :  { %29 = vperm.xlu0 %75, %v13_v3  }
  0x91   :  { %v17_v4 = vpop.xlane.xlu0 %16 }
  0x92   :  { %v18_v5 = vsub.f32 %v12_v0, %v17_v4 }
  0x94   :  { %v19_v6 = vmul.f32 1.442695, %v18_v5 }
  0x96   :  { %76 = vpow2.f32 %v19_v6 }
  0x99   :  { %v30_v9 = vpop.permute.xlu0 %29 }
  0x9a   :  { %vm31_vm1 = vcmp.eq.s32.totalorder %v27_v8, %v30_v9 }
  0x9b   :  { %v32_v12 = vsel %vm31_vm1, %v18_v5, 0.0 }
  0x9c   :  { %v33_v13 = vsel %vm14_vm0, %v32_v12, 0.0 }
  0xa0   :  { %v77_v10 = vpop.eup %76 }
  0xa1   :  { %v21_v11 = vsel %vm14_vm0, %v77_v10, 0.0 }
  0xa2   :  { %22 = vadd.xlane.f32.xlu1 %v21_v11 }
  0xa6   :  { %34 = vadd.xlane.f32.xlu1 %v33_v13 }
 0x12f   :  { %v23_v14 = vpop.xlane.xlu1 %22 }
 0x130   :  { %78 = vlog2.f32 %v23_v14 }
 0x133   :  { %v35_v17 = vpop.xlane.xlu1 %34 }
 0x13a   :  { %v79_v15 = vpop.eup %78 }
 0x13b   :  { %v25_v16 = vmul.f32 0.6931472, %v79_v15 }
 0x13d   :  { %v36_v18 = vsub.f32 %v35_v17, %v25_v16 }
 0x13f   :  { %v37_v19 = vmul.f32 1.442695, %v36_v18 }
 0x141   :  { %80 = vpow2.f32 %v37_v19 }
 0x14b   :  { %v81_v20 = vpop.eup %80 }
 0x14c   :  { %v39_v21 = vsub.f32 1.0, %v81_v20 }
 0x14e   :  { %v40_v22 = vmul.f32 %v39_v21, %v39_v21 }
 0x150   :  { %v41_v23 = vmul.f32 -1.0, %v40_v22 }
 0x152   :  { %v42_v24 = vmul.f32 %v41_v23, %v36_v18 }
 0x154   :  { %v44_v25 = vsel %vm43_vm2, %v42_v24, 0.0 }
 0x155   :  { %45 = vadd.xlane.f32.xlu1 %v44_v25 }
 0x1e2   :  { %v46_v26 = vpop.xlane.xlu1 %45 }
 0x1e3   :  { %v47_v27 = vrot.slane %v46_v26, 4 }
 0x1e5   :  { %v48_v28 = vadd.f32 %v47_v27, %v46_v26 }
 0x1e7   :  { %v49_v29 = vrot.slane %v48_v28, 2 }
 0x1e9   :  { %v50_v30 = vadd.f32 %v49_v29, %v48_v28 }
 0x1eb   :  { %v51_v31 = vrot.slane %v50_v30, 1 }
 0x1ed   :  { %v52_v32 = vadd.f32 %v51_v31, %v50_v30 }
 0x1ef   :  { %71 = vpush %v52_v32 }
 0x220   :  { %s72_s13 = spop %71 }
 0x221   :  { %v54_v33 = vstv %s72_s13 }
 0x222   :  { %56 = vst.msk [vmem:[#allocation2] sm:$0x1] %vm55_vm3, %v54_v33 }
 0x223   :  { %93 = shalt.err (!%p90_p4)
}
 0x224   :  { %s94_s18 = scalar_lea.hbm %s146_s2, 16 }
 0x225   :  { %p95_p5 = scmp.ne.s32.totalorder %s146_s2, %s94_s18  ;;  %p98_p6 = scmp.lt.u32.totalorder %s94_s18, %s146_s2 }
 0x227   :  { %p100_p7 = pnand %p98_p6, %p95_p5 }
 0x229   :  { %103 = shalt.err (!%p100_p7)
}
 0x22a   :  { %66 = dma.vmem_to_hbm [thread:$0]  %s64_s1, 16, %s146_s2, [#allocation3]  }
 0x22b   :  { %104 = dma.done.wait [#allocation3], 16  }
 0x22c   :  { %105 = vsyncadd [#allocation3], 4294967280 }
 0x22d   :  { %70 = vsyncpa [#allocation3], 1 }

</bundles_post_ra>
